<compile_context>
chip_gen: v7x
topology: tpu7x:2x2x1
jax: 0.10.0
libtpu: 0.0.40
codegen_flags: <defaults>
</compile_context>

<pallas_src>
import functools

import jax
import jax.numpy as jnp
from jax import lax
from jax.experimental import pallas as pl
from jax.experimental.pallas import tpu as pltpu


# ----------------------------- Pallas kernel ------------------------------- #
def _cem_kernel(actions_ref, w1a_ref, b1eff_ref, w2t_ref, b2_ref, best_ref,
                *, iterations):
    """Fused CEM loop: a <- tanh^N(a0); Q = MLP(a); best = a[argmax Q]."""
    a = actions_ref[...]                                      # (B, A)

    # The reference re-applies tanh each iteration and never resamples from
    # (mean, std), so only the tanh chain survives across iterations.
    # TODO(synk): if Normal(mean, std) resampling is ever restored, move the
    # Q evaluation / selection back inside this loop (still a single launch).
    for _ in range(iterations):
        a = jnp.tanh(a)                                       # EUP

    # hidden = relu(a @ W1_a + b1_eff)   (state branch folded into b1_eff).
    # K = A is tiny; on v5e this could become 8 VPU FMAs, on v6e/v7x the MXU
    # slot is otherwise idle so a single dot is fine.
    h = jnp.dot(a, w1a_ref[...], preferred_element_type=jnp.float32)
    h = jnp.maximum(h + b1eff_ref[...], 0.0)                  # (B, H)

    # q = h @ w2 + b2  as an XLU lane reduction (output width is 1),
    # with b2 read as a scalar from SMEM.  q never leaves vregs.
    q = jnp.sum(h * w2t_ref[...], axis=-1, keepdims=True) + b2_ref[0, 0]  # (B, 1)

    # In-kernel argmax over candidates, pure vector ops (first max wins,
    # matching argmax / top_k idx[0] tie-breaking).
    B = q.shape[0]
    row_ids = lax.broadcasted_iota(jnp.int32, q.shape, 0)     # (B, 1)
    best_idx = jnp.min(jnp.where(q >= jnp.max(q), row_ids, B))
    best_ref[...] = jnp.sum(jnp.where(row_ids == best_idx, a, 0.0),
                            axis=0, keepdims=True)            # (1, A)


# ------------------------------ CEM forward -------------------------------- #
@functools.partial(jax.jit, static_argnames=("action_dim", "cem_batch",
                                             "cem_iterations", "cem_topk"))
def cross_entropy_guided_policy_forward(state, qparams, *, action_dim,
                                        cem_batch, cem_iterations, cem_topk,
                                        key):
    """Mirrors CrossEntropyGuidedPolicy.forward for a 1-D state input."""
    # TODO(synk): the 2-D batched-state branch of the reference uses a buggy
    # flat-index np.take gather; it is not reproduced here.
    del cem_topk  # only idx[0] (the argmax) is ever consumed by the reference.
    state = state.astype(jnp.float32)

    # State is constant across candidates and CEM iterations: fold its W1
    # contribution into the bias once.  Removes one MXU matmul plus the (B,S)
    # broadcast and (S,H) weight DMAs from the kernel hot path.
    b1_eff = state[None, :] @ qparams["w1s"] + qparams["b1"]   # (1, H)
    w2t = qparams["w2"].T                                      # (1, H)

    # actions ~ Normal(0, 1), shape (CEM_BATCH, ACTION_DIM)  (deterministic key)
    actions0 = jax.random.normal(key, (cem_batch, action_dim), dtype=jnp.float32)

    vmem = pl.BlockSpec(memory_space=pltpu.MemorySpace.VMEM)
    smem = pl.BlockSpec(memory_space=pltpu.MemorySpace.SMEM)
    best = pl.pallas_call(
        functools.partial(_cem_kernel, iterations=cem_iterations),
        out_shape=jax.ShapeDtypeStruct((1, action_dim), jnp.float32),
        in_specs=[vmem, vmem, vmem, vmem, smem],
        out_specs=vmem,
    )(actions0, qparams["w1a"], b1_eff, w2t,
      qparams["b2"].astype(jnp.float32))
    return best[0]


# ----------------------- pure-JAX reference (for checking) ----------------- #
def _reference_forward(state, qparams, *, action_dim, cem_batch,
                       cem_iterations, cem_topk, key):
    state = state.astype(jnp.float32)
    actions = jax.random.normal(key, (cem_batch, action_dim), dtype=jnp.float32)
    states = jnp.broadcast_to(state[None, :], (cem_batch, state.shape[0]))
    best = None
    for _ in range(cem_iterations):
        actions = jnp.tanh(actions)
        h = jnp.maximum(states @ qparams["w1s"] + actions @ qparams["w1a"]
                        + qparams["b1"], 0.0)
        qs = (h @ qparams["w2"] + qparams["b2"])[:, 0]
        _, idx = jax.lax.top_k(qs, cem_topk)   # idx[0] == argmax
        best = actions[idx[0]]
    return best


# ------------------------ synthetic Q-function params ---------------------- #
def init_q_params(key, state_dim, action_dim, hidden):
    k1, k2, k3 = jax.random.split(key, 3)
    return {
        "w1s": 0.1 * jax.random.normal(k1, (state_dim, hidden), jnp.float32),
        "w1a": 0.1 * jax.random.normal(k2, (action_dim, hidden), jnp.float32),
        "b1": jnp.zeros((1, hidden), jnp.float32),
        "w2": 0.1 * jax.random.normal(k3, (hidden, 1), jnp.float32),
        "b2": jnp.zeros((1, 1), jnp.float32),
    }


if __name__ == "__main__":
    # params dict analogue of the PyTorch module
    ACTION_DIM = 8
    CEM_ITERATIONS = 3
    CEM_BATCH = 64
    CEM_TOPK = 8
    STATE_DIM = 16
    HIDDEN = 32

    root = jax.random.PRNGKey(0)
    k_state, k_actions, k_q = jax.random.split(root, 3)

    state = jax.random.normal(k_state, (STATE_DIM,), jnp.float32)
    qparams = init_q_params(k_q, STATE_DIM, ACTION_DIM, HIDDEN)

    best = cross_entropy_guided_policy_forward(
        state, qparams,
        action_dim=ACTION_DIM,
        cem_batch=CEM_BATCH,
        cem_iterations=CEM_ITERATIONS,
        cem_topk=CEM_TOPK,
        key=k_actions,
    )
    best = jax.block_until_ready(best)

    ref = _reference_forward(
        state, qparams,
        action_dim=ACTION_DIM,
        cem_batch=CEM_BATCH,
        cem_iterations=CEM_ITERATIONS,
        cem_topk=CEM_TOPK,
        key=k_actions,
    )

    assert best.shape == (ACTION_DIM,)
    assert bool(jnp.all(jnp.isfinite(best)))
    assert bool(jnp.allclose(best, ref, rtol=1e-5, atol=1e-5)), (best, ref)
    print("KERNEL_OK")
</pallas_src>

<mosaic_0001>
module attributes {stable_mosaic.version = 11 : i64} {
  func.func @_cem_kernel(%arg0: memref<64x8xf32, #tpu.memory_space<vmem>>, %arg1: memref<8x32xf32, #tpu.memory_space<vmem>>, %arg2: memref<1x32xf32, #tpu.memory_space<vmem>>, %arg3: memref<1x32xf32, #tpu.memory_space<vmem>>, %arg4: memref<1x1xf32, #tpu.memory_space<smem>>, %arg5: memref<1x8xf32, #tpu.memory_space<vmem>>) attributes {dimension_semantics = [], scalar_prefetch = 0 : i64, scratch_operands = 0 : i64, tpu.core_type = #tpu.core_type<tc>} {
    %c0 = arith.constant 0 : index
    %c0_0 = arith.constant 0 : index
    %0 = vector.load %arg0[%c0, %c0_0] : memref<64x8xf32, #tpu.memory_space<vmem>>, vector<64x8xf32>
    %1 = math.tanh %0 : vector<64x8xf32>
    %2 = math.tanh %1 : vector<64x8xf32>
    %3 = math.tanh %2 : vector<64x8xf32>
    %c0_1 = arith.constant 0 : index
    %c0_2 = arith.constant 0 : index
    %4 = vector.load %arg1[%c0_1, %c0_2] : memref<8x32xf32, #tpu.memory_space<vmem>>, vector<8x32xf32>
    %cst = arith.constant dense<0.000000e+00> : vector<64x32xf32>
    %5 = tpu.matmul %3, %4, %cst {dimension_numbers = #tpu.dot_dimension_numbers<[1], [0], [0], [1], [0, 0, 1, 1], [], []>} : vector<64x8xf32>, vector<8x32xf32>, vector<64x32xf32> -> vector<64x32xf32>
    %c0_3 = arith.constant 0 : index
    %c0_4 = arith.constant 0 : index
    %6 = vector.load %arg2[%c0_3, %c0_4] : memref<1x32xf32, #tpu.memory_space<vmem>>, vector<1x32xf32>
    %7 = vector.broadcast %6 : vector<1x32xf32> to vector<64x32xf32>
    %8 = arith.addf %5, %7 : vector<64x32xf32>
    %cst_5 = arith.constant 0.000000e+00 : f32
    %9 = vector.broadcast %cst_5 : f32 to vector<64x32xf32>
    %10 = arith.maximumf %8, %9 : vector<64x32xf32>
    %c0_6 = arith.constant 0 : index
    %c0_7 = arith.constant 0 : index
    %11 = vector.load %arg3[%c0_6, %c0_7] : memref<1x32xf32, #tpu.memory_space<vmem>>, vector<1x32xf32>
    %12 = vector.broadcast %11 : vector<1x32xf32> to vector<64x32xf32>
    %13 = arith.mulf %10, %12 : vector<64x32xf32>
    %cst_8 = arith.constant dense<0.000000e+00> : vector<64xf32>
    %14 = vector.multi_reduction <add>, %13, %cst_8 [1] : vector<64x32xf32> to vector<64xf32>
    %15 = vector.shape_cast %14 : vector<64xf32> to vector<64x1xf32>
    %c0_9 = arith.constant 0 : index
    %c0_10 = arith.constant 0 : index
    %16 = memref.load %arg4[%c0_9, %c0_10] : memref<1x1xf32, #tpu.memory_space<smem>>
    %17 = vector.broadcast %16 : f32 to vector<64x1xf32>
    %18 = arith.addf %15, %17 : vector<64x1xf32>
    %19 = tpu.iota {dimensions = array<i32: 0>} : vector<64x1xi32>
    %20 = vector.shape_cast %18 : vector<64x1xf32> to vector<1x64x1xf32>
    %cst_11 = arith.constant dense<0xFF800000> : vector<1xf32>
    %21 = vector.multi_reduction <maximumf>, %20, %cst_11 [1, 2] : vector<1x64x1xf32> to vector<1xf32>
    %22 = vector.shape_cast %21 : vector<1xf32> to vector<1x1x1xf32>
    %23 = vector.extract %22[0, 0, 0] : f32 from vector<1x1x1xf32>
    %24 = vector.broadcast %23 : f32 to vector<64x1xf32>
    %25 = arith.cmpf oge, %18, %24 : vector<64x1xf32>
    %c64_i32 = arith.constant 64 : i32
    %26 = vector.broadcast %c64_i32 : i32 to vector<64x1xi32>
    %27 = arith.select %25, %19, %26 : vector<64x1xi1>, vector<64x1xi32>
    %28 = vector.shape_cast %27 : vector<64x1xi32> to vector<1x64x1xi32>
    %cst_12 = arith.constant dense<2147483647> : vector<1xi32>
    %29 = vector.multi_reduction <minsi>, %28, %cst_12 [1, 2] : vector<1x64x1xi32> to vector<1xi32>
    %30 = vector.shape_cast %29 : vector<1xi32> to vector<1x1x1xi32>
    %31 = vector.extract %30[0, 0, 0] : i32 from vector<1x1x1xi32>
    %32 = vector.broadcast %31 : i32 to vector<64x1xi32>
    %33 = arith.cmpi eq, %19, %32 : vector<64x1xi32>
    %cst_13 = arith.constant 0.000000e+00 : f32
    %34 = vector.shape_cast %33 : vector<64x1xi1> to vector<64x1xi1>
    %35 = vector.broadcast %34 : vector<64x1xi1> to vector<64x8xi1>
    %36 = vector.broadcast %cst_13 : f32 to vector<64x8xf32>
    %37 = arith.select %35, %3, %36 : vector<64x8xi1>, vector<64x8xf32>
    %cst_14 = arith.constant dense<0.000000e+00> : vector<8xf32>
    %38 = vector.multi_reduction <add>, %37, %cst_14 [0] : vector<64x8xf32> to vector<8xf32>
    %39 = vector.shape_cast %38 : vector<8xf32> to vector<1x8xf32>
    %c0_15 = arith.constant 0 : index
    %c0_16 = arith.constant 0 : index
    %40 = vector.load %arg5[%c0_15, %c0_16] : memref<1x8xf32, #tpu.memory_space<vmem>>, vector<1x8xf32>
    tpu.vector_store %arg5[%c0_15, %c0_16], %39 {strides = array<i32>} : memref<1x8xf32, #tpu.memory_space<vmem>>, vector<1x8xf32>,
    return
  }
}

</mosaic_0001>

<bundles_post_ra>
// kernel: cross_entropy_guided_policy_forward.1
= control target key start
LH: loop header
LB: loop body
LE: loop exit
PB: predicated region body
PF: predicated region fallthrough
CT: control target
= control target key end

     0   :  { %s643_s0 = inlined_call_operand.vmem [shape: f32[64,8], index: 0, kind: input, shape index: {}]   ;;  %s644_s1 = inlined_call_operand.vmem [shape: f32[8,32], index: 1, kind: input, shape index: {}]   ;;  %s645_s2 = inlined_call_operand.vmem [shape: f32[1,32], index: 2, kind: input, shape index: {}]   ;;  %s646_s3 = inlined_call_operand.vmem [shape: f32[1,32], index: 3, kind: input, shape index: {}]   ;;  %s647_s4 = inlined_call_operand.<no memory space> [shape: f32[1,1], index: 4, kind: input, shape index: {}]   ;;  %s648_s5 = inlined_call_operand.hbm [shape: f32[1,8], index: 5, kind: output, shape index: {}]  }
   0x1   :  { %v54_v0 = vld [vmem:[%s644_s1] sm:$0xff]  ;;  %v23_v3 = vld [vmem:[%s643_s0 + $0x8] sm:$0xff]  ;;  %v24_v5 = vld [vmem:[%s643_s0 + $0x10] sm:$0xff] }
   0x2   :  { %v22_v1 = vld [vmem:[%s643_s0] sm:$0xff]  ;;  %403 = vmatprep.subr.mxu0 %v54_v0  ;;  %417 = vmatprep.subr.mxu1 %v54_v0  ;;  %v27_v4 = vld [vmem:[%s643_s0 + $0x28] sm:$0xff]  ;;  %v25_v6 = vld [vmem:[%s643_s0 + $0x18] sm:$0xff] }
   0x3   :  { %v26_v2 = vld [vmem:[%s643_s0 + $0x20] sm:$0xff]  ;;  %424 = vtanh.f32 %v22_v1  ;;  %404 = vmatpush3.msra.mxu0 %v54_v0  ;;  %418 = vmatpush3.msra.mxu1 %v54_v0 }
   0x4   :  { %426 = vtanh.f32 %v26_v2 }
   0x5   :  { %428 = vtanh.f32 %v23_v3 }
   0x6   :  { %11 = vsyncpa [#allocation4], 0  ;;  %430 = vtanh.f32 %v27_v4  ;;  %v28_v7 = vld [vmem:[%s643_s0 + $0x30] sm:$0xff]  ;;  %v29_v8 = vld [vmem:[%s643_s0 + $0x38] sm:$0xff]  ;;  %vm62_vm0 = vcmask 64512   ;;  %vm215_vm1 = vcmask 261120  }
   0x7   :  { %432 = vtanh.f32 %v24_v5  ;;  %v384_v33 = vld [vmem:[%s645_s2] ss:$0 sm:$0xff]  ;;  %s496_s14 = smov [#allocation3]  }
   0x8   :  { %434 = vtanh.f32 %v25_v6  ;;  %v393_v41 = vld [vmem:[%s646_s3] ss:$0 sm:$0xff]  ;;  %s376_s15 = sshll.u32 %s496_s14, 4  ;;  %s377_s15 = int_to_ptr.vmem [resolvable:$true] %s376_s15 }
   0x9   :  { %436 = vtanh.f32 %v28_v7  ;;  %s472_s16 = scalar_lea.vmem %s377_s15, 16  ;;  %s476_s17 = scalar_lea.vmem %s377_s15, 32 }
   0xa   :  { %438 = vtanh.f32 %v29_v8  ;;  %p473_p0 = scmp.ne.s32.totalorder %s377_s15, %s472_s16  ;;  %p477_p1 = scmp.lt.s32.totalorder %s377_s15, %s377_s15 }
   0xb   :  { %p478_p2 = scmp.lt.s32.totalorder %s476_s17, %s472_s16 }
   0xd   :  { %v425_v9 = vpop.eup %424  ;;  %p479_p3 = por %p478_p2, %p477_p1 }
   0xe   :  { %v427_v10 = vpop.eup %426  ;;  %440 = vtanh.f32 %v425_v9 }
   0xf   :  { %v429_v11 = vpop.eup %428  ;;  %442 = vtanh.f32 %v427_v10  ;;  %p480_p4 = pnand %p479_p3, %p473_p0 }
  0x10   :  { %v431_v12 = vpop.eup %430  ;;  %444 = vtanh.f32 %v429_v11 }
  0x11   :  { %v433_v13 = vpop.eup %432  ;;  %446 = vtanh.f32 %v431_v12 }
  0x12   :  { %v435_v14 = vpop.eup %434  ;;  %448 = vtanh.f32 %v433_v13 }
  0x13   :  { %v437_v15 = vpop.eup %436  ;;  %450 = vtanh.f32 %v435_v14 }
  0x14   :  { %v439_v16 = vpop.eup %438  ;;  %452 = vtanh.f32 %v437_v15 }
  0x15   :  { %454 = vtanh.f32 %v439_v16  ;;  %v241_v16 = vstv %s647_s4 }
  0x18   :  { %v441_v17 = vpop.eup %440 }
  0x19   :  { %v443_v18 = vpop.eup %442  ;;  %456 = vtanh.f32 %v441_v17 }
  0x1a   :  { %v445_v19 = vpop.eup %444  ;;  %458 = vtanh.f32 %v443_v18 }
  0x1b   :  { %v447_v20 = vpop.eup %446  ;;  %460 = vtanh.f32 %v445_v19 }
  0x1c   :  { %v449_v21 = vpop.eup %448  ;;  %462 = vtanh.f32 %v447_v20 }
  0x1d   :  { %v451_v22 = vpop.eup %450  ;;  %464 = vtanh.f32 %v449_v21 }
  0x1e   :  { %v453_v23 = vpop.eup %452  ;;  %466 = vtanh.f32 %v451_v22 }
  0x1f   :  { %v455_v24 = vpop.eup %454  ;;  %468 = vtanh.f32 %v453_v23 }
  0x20   :  { %470 = vtanh.f32 %v455_v24 }
  0x23   :  { %v554_v25 = vpop.eup %456 }
  0x24   :  { %v556_v26 = vpop.eup %458  ;;  %405 = vmatprep.mubr.msk.f32.mxu0 %vm62_vm0, %v554_v25 }
  0x25   :  { %v560_v27 = vpop.eup %460  ;;  %411 = vmatprep.mubr.msk.f32.mxu1 %vm62_vm0, %v556_v26 }
  0x26   :  { %v564_v28 = vpop.eup %462  ;;  %406 = vmatmul.mubr.msk.f32.vlgmr.msra.gmra.mrb[0].mxu0 %vm62_vm0, %v560_v27 }
  0x27   :  { %v568_v29 = vpop.eup %464  ;;  %412 = vmatmul.mubr.msk.f32.vlgmr.msra.gmra.mrb[0].mxu1 %vm62_vm0, %v564_v28 }
  0x28   :  { %v572_v30 = vpop.eup %466  ;;  %408 = vmatprep.mubr.msk.f32.mxu0 %vm62_vm0, %v568_v29 }
  0x29   :  { %v576_v31 = vpop.eup %468 }
  0x2a   :  { %v578_v32 = vpop.eup %470  ;;  %409 = vmatmul.mubr.msk.f32.gmra.mrb[2].mxu0 %vm62_vm0, %v572_v30  ;;  %414 = vmatprep.mubr.msk.f32.mxu1 %vm62_vm0, %v576_v31 }
  0x2b   :  { %415 = vmatmul.mubr.msk.f32.gmra.mrb[2].mxu1 %vm62_vm0, %v578_v32 }
  0xf9   :  { %v407_v34 = vpop.f32.mrb[0].mxu0 }
  0xfa   :  { %v159_v35 = vadd.f32 %v407_v34, %v384_v33  ;;  %v413_v36 = vpop.f32.mrb[0].mxu1  ;;  %v153_v37 = vpop.f32.mrb[1].mxu0 }
  0xfb   :  { %v179_v38 = vadd.f32 %v413_v36, %v384_v33  ;;  %v154_v39 = vadd.f32 %v384_v33, %v153_v37  ;;  %v173_v40 = vpop.f32.mrb[1].mxu1 }
  0xfc   :  { %v193_v42 = vmax.f32 %v159_v35, 0.0  ;;  %v174_v43 = vadd.f32 %v384_v33, %v173_v40 }
  0xfd   :  { %v197_v44 = vmax.f32 %v179_v38, 0.0  ;;  %v192_v45 = vmax.f32 %v154_v39, 0.0  ;;  %v410_v46 = vpop.f32.mrb[2].mxu0 }
  0xfe   :  { %v169_v47 = vadd.f32 %v410_v46, %v384_v33  ;;  %v163_v48 = vpop.f32.mrb[3].mxu0  ;;  %v208_v49 = vmul.f32 %v393_v41, %v193_v42  ;;  %v416_v50 = vpop.f32.mrb[2].mxu1  ;;  %v196_v51 = vmax.f32 %v174_v43, 0.0 }
  0xff   :  { %v164_v52 = vadd.f32 %v384_v33, %v163_v48  ;;  %v212_v53 = vmul.f32 %v393_v41, %v197_v44  ;;  %v189_v54 = vadd.f32 %v416_v50, %v384_v33  ;;  %v183_v55 = vpop.f32.mrb[3].mxu1  ;;  %v207_v59 = vmul.f32 %v393_v41, %v192_v45 }
 0x100   :  { %v195_v56 = vmax.f32 %v169_v47, 0.0  ;;  %v219_v57 = vsel %vm215_vm1, %v208_v49, 0.0  ;;  %v184_v58 = vadd.f32 %v384_v33, %v183_v55  ;;  %v211_v3 = vmul.f32 %v393_v41, %v196_v51 }
 0x101   :  { %v194_v60 = vmax.f32 %v164_v52, 0.0  ;;  %v231_v61 = vsel %vm215_vm1, %v212_v53, 0.0  ;;  %220 = vadd.xlane.f32.xlu0 %v219_v57  ;;  %v199_v0 = vmax.f32 %v189_v54, 0.0  ;;  %v216_v2 = vsel %vm215_vm1, %v207_v59, 0.0 }
 0x102   :  { %232 = vadd.xlane.f32.xlu1 %v231_v61  ;;  %v198_v62 = vmax.f32 %v184_v58, 0.0  ;;  %v210_v63 = vmul.f32 %v393_v41, %v195_v56  ;;  %v228_v7 = vsel %vm215_vm1, %v211_v3, 0.0  ;;  %v250_v49 = vlaneseq }
 0x103   :  { %v209_v4 = vmul.f32 %v393_v41, %v194_v60  ;;  %v214_v6 = vmul.f32 %v393_v41, %v199_v0 }
 0x104   :  { %v225_v1 = vsel %vm215_vm1, %v210_v63, 0.0  ;;  %v213_v5 = vmul.f32 %v393_v41, %v198_v62  ;;  %v251_v50 = vshrl.u32 %v250_v49, 7 }
 0x105   :  { %217 = vadd.xlane.f32.xlu0 %v216_v2  ;;  %v222_v8 = vsel %vm215_vm1, %v209_v4, 0.0  ;;  %v237_v10 = vsel %vm215_vm1, %v214_v6, 0.0 }
 0x106   :  { %226 = vadd.xlane.f32.xlu1 %v225_v1  ;;  %v234_v9 = vsel %vm215_vm1, %v213_v5, 0.0  ;;  %v252_v51 = vadd.s32 8, %v251_v50  ;;  %v253_v52 = vadd.s32 16, %v251_v50  ;;  %v254_v53 = vadd.s32 24, %v251_v50 }
 0x107   :  { %v255_v54 = vadd.s32 32, %v251_v50  ;;  %v603_v56 = vadd.s32 40, %v251_v50  ;;  %v605_v57 = vadd.s32 48, %v251_v50  ;;  %v607_v58 = vadd.s32 56, %v251_v50 }
 0x109   :  { %229 = vadd.xlane.f32.xlu0 %v228_v7 }
 0x10a   :  { %223 = vadd.xlane.f32.xlu1 %v222_v8 }
 0x10d   :  { %235 = vadd.xlane.f32.xlu0 %v234_v9 }
 0x10e   :  { %238 = vadd.xlane.f32.xlu1 %v237_v10 }
 0x18e   :  { %v221_v11 = vpop.xlane.xlu0 %220 }
 0x18f   :  { %v233_v12 = vpop.xlane.xlu1 %232  ;;  %v243_v20 = vadd.f32 %v241_v16, %v221_v11 }
 0x190   :  { %v247_v19 = vadd.f32 %v241_v16, %v233_v12 }
 0x192   :  { %v218_v13 = vpop.xlane.xlu0 %217  ;;  %v260_v38 = vmax.f32 %v243_v20, %v247_v19 }
 0x193   :  { %v227_v14 = vpop.xlane.xlu1 %226  ;;  %v242_v21 = vadd.f32 %v241_v16, %v218_v13 }
 0x194   :  { %v245_v34 = vadd.f32 %v241_v16, %v227_v14 }
 0x196   :  { %v230_v15 = vpop.xlane.xlu0 %229 }
 0x197   :  { %v224_v17 = vpop.xlane.xlu1 %223  ;;  %v246_v18 = vadd.f32 %v241_v16, %v230_v15 }
 0x198   :  { %v244_v23 = vadd.f32 %v241_v16, %v224_v17 }
 0x199   :  { %v259_v35 = vmax.f32 %v242_v21, %v246_v18 }
 0x19a   :  { %v236_v22 = vpop.xlane.xlu0 %235 }
 0x19b   :  { %v239_v24 = vpop.xlane.xlu1 %238  ;;  %v248_v33 = vadd.f32 %v241_v16, %v236_v22  ;;  %v263_v40 = vmax.f32 %v259_v35, %v260_v38 }
 0x19c   :  { %v249_v36 = vadd.f32 %v241_v16, %v239_v24 }
 0x19d   :  { %v261_v37 = vmax.f32 %v244_v23, %v248_v33 }
 0x19e   :  { %v262_v39 = vmax.f32 %v245_v34, %v249_v36 }
 0x1a0   :  { %v264_v41 = vmax.f32 %v261_v37, %v262_v39 }
 0x1a2   :  { %v265_v42 = vmax.f32 %v263_v40, %v264_v41 }
 0x1a4   :  { %v266_v43 = vrot.slane %v265_v42, 4 }
 0x1a6   :  { %v267_v44 = vmax.f32 %v265_v42, %v266_v43 }
 0x1a8   :  { %v268_v45 = vrot.slane %v267_v44, 2 }
 0x1aa   :  { %v269_v46 = vmax.f32 %v267_v44, %v268_v45 }
 0x1ac   :  { %v270_v47 = vrot.slane %v269_v46, 1 }
 0x1ae   :  { %v271_v48 = vmax.f32 %v269_v46, %v270_v47 }
 0x1b0   :  { %419 = vpush %v271_v48 }
 0x1e1   :  { %s420_s4 = spop %419 }
 0x1e2   :  { %v273_v55 = vstv %s420_s4 }
 0x1e3   :  { %vm274_vm2 = vcmp.ge.f32.partialorder %v242_v21, %v273_v55  ;;  %vm275_vm3 = vcmp.ge.f32.partialorder %v243_v20, %v273_v55  ;;  %vm276_vm4 = vcmp.ge.f32.partialorder %v244_v23, %v273_v55  ;;  %vm277_vm5 = vcmp.ge.f32.partialorder %v245_v34, %v273_v55 }
 0x1e4   :  { %vm278_vm6 = vcmp.ge.f32.partialorder %v246_v18, %v273_v55  ;;  %vm279_vm7 = vcmp.ge.f32.partialorder %v247_v19, %v273_v55  ;;  %vm280_vm8 = vcmp.ge.f32.partialorder %v248_v33, %v273_v55  ;;  %vm281_vm9 = vcmp.ge.f32.partialorder %v249_v36, %v273_v55 }
 0x1e5   :  { %v282_v59 = vsel %vm274_vm2, %v251_v50, 64  ;;  %v283_v60 = vsel %vm275_vm3, %v252_v51, 64  ;;  %v284_v61 = vsel %vm276_vm4, %v253_v52, 64  ;;  %v285_v62 = vsel %vm277_vm5, %v254_v53, 64 }
 0x1e6   :  { %v286_v63 = vsel %vm278_vm6, %v255_v54, 64  ;;  %v287_v0 = vsel %vm279_vm7, %v603_v56, 64  ;;  %v288_v1 = vsel %vm280_vm8, %v605_v57, 64  ;;  %v289_v2 = vsel %vm281_vm9, %v607_v58, 64 }
 0x1e7   :  { %vm290_vm10 = vcmp.lt.s32.totalorder %v282_v59, %v286_v63  ;;  %vm292_vm11 = vcmp.lt.s32.totalorder %v283_v60, %v287_v0  ;;  %vm294_vm12 = vcmp.lt.s32.totalorder %v284_v61, %v288_v1  ;;  %vm296_vm13 = vcmp.lt.s32.totalorder %v285_v62, %v289_v2 }
 0x1e8   :  { %v291_v3 = vsel %vm290_vm10, %v282_v59, %v286_v63  ;;  %v293_v4 = vsel %vm292_vm11, %v283_v60, %v287_v0  ;;  %v295_v5 = vsel %vm294_vm12, %v284_v61, %v288_v1  ;;  %v297_v6 = vsel %vm296_vm13, %v285_v62, %v289_v2 }
 0x1e9   :  { %vm298_vm14 = vcmp.lt.s32.totalorder %v291_v3, %v293_v4  ;;  %vm300_vm15 = vcmp.lt.s32.totalorder %v295_v5, %v297_v6  ;;  %vm368_vm13 = vcmask 57344  }
 0x1ea   :  { %v299_v7 = vsel %vm298_vm14, %v291_v3, %v293_v4  ;;  %v301_v8 = vsel %vm300_vm15, %v295_v5, %v297_v6 }
 0x1eb   :  { %vm302_vm1 = vcmp.lt.s32.totalorder %v299_v7, %v301_v8 }
 0x1ec   :  { %v303_v9 = vsel %vm302_vm1, %v299_v7, %v301_v8 }
 0x1ed   :  { %v304_v10 = vrot.slane %v303_v9, 4 }
 0x1ef   :  { %vm305_vm2 = vcmp.lt.s32.totalorder %v303_v9, %v304_v10 }
 0x1f0   :  { %v306_v11 = vsel %vm305_vm2, %v303_v9, %v304_v10 }
 0x1f1   :  { %v307_v12 = vrot.slane %v306_v11, 2 }
 0x1f3   :  { %vm308_vm3 = vcmp.lt.s32.totalorder %v306_v11, %v307_v12 }
 0x1f4   :  { %v309_v13 = vsel %vm308_vm3, %v306_v11, %v307_v12 }
 0x1f5   :  { %v310_v14 = vrot.slane %v309_v13, 1 }
 0x1f7   :  { %vm311_vm4 = vcmp.lt.s32.totalorder %v309_v13, %v310_v14 }
 0x1f8   :  { %v312_v15 = vsel %vm311_vm4, %v309_v13, %v310_v14 }
 0x1f9   :  { %421 = vpush %v312_v15 }
 0x22a   :  { %s422_s13 = spop %421 }
 0x22b   :  { %v314_v16 = vstv %s422_s13 }
 0x22c   :  { %vm315_vm5 = vcmp.eq.s32.totalorder %v251_v50, %v314_v16  ;;  %vm316_vm6 = vcmp.eq.s32.totalorder %v252_v51, %v314_v16  ;;  %vm317_vm7 = vcmp.eq.s32.totalorder %v253_v52, %v314_v16  ;;  %vm318_vm8 = vcmp.eq.s32.totalorder %v254_v53, %v314_v16 }
 0x22d   :  { %v339_v17 = vsel %vm315_vm5, %v554_v25, 0.0  ;;  %v340_v18 = vsel %vm316_vm6, %v560_v27, 0.0  ;;  %v341_v19 = vsel %vm317_vm7, %v568_v29, 0.0  ;;  %vm319_vm9 = vcmp.eq.s32.totalorder %v255_v54, %v314_v16 }
 0x22e   :  { %v347_v20 = vsel %vm62_vm0, %v339_v17, 0.0  ;;  %v348_v21 = vsel %vm62_vm0, %v340_v18, 0.0  ;;  %v342_v22 = vsel %vm318_vm8, %v572_v30, 0.0  ;;  %vm320_vm10 = vcmp.eq.s32.totalorder %v603_v56, %v314_v16 }
 0x22f   :  { %v349_v23 = vadd.f32 %v348_v21, %v347_v20  ;;  %v350_v24 = vsel %vm62_vm0, %v341_v19, 0.0  ;;  %v343_v33 = vsel %vm319_vm9, %v556_v26, 0.0  ;;  %v352_v25 = vsel %vm62_vm0, %v342_v22, 0.0 }
 0x230   :  { %vm321_vm11 = vcmp.eq.s32.totalorder %v605_v57, %v314_v16  ;;  %v344_v27 = vsel %vm320_vm10, %v564_v28, 0.0  ;;  %vm322_vm12 = vcmp.eq.s32.totalorder %v607_v58, %v314_v16  ;;  %v354_v35 = vsel %vm62_vm0, %v343_v33, 0.0 }
 0x231   :  { %v351_v34 = vadd.f32 %v350_v24, %v349_v23  ;;  %v345_v30 = vsel %vm321_vm11, %v576_v31, 0.0  ;;  %v356_v37 = vsel %vm62_vm0, %v344_v27, 0.0  ;;  %v346_v38 = vsel %vm322_vm12, %v578_v32, 0.0 }
 0x232   :  { %v358_v39 = vsel %vm62_vm0, %v345_v30, 0.0  ;;  %v360_v41 = vsel %vm62_vm0, %v346_v38, 0.0 }
 0x233   :  { %v353_v29 = vadd.f32 %v352_v25, %v351_v34 }
 0x235   :  { %v355_v36 = vadd.f32 %v354_v35, %v353_v29 }
 0x237   :  { %v357_v26 = vadd.f32 %v356_v37, %v355_v36 }
 0x239   :  { %v359_v40 = vadd.f32 %v358_v39, %v357_v26 }
 0x23b   :  { %v361_v42 = vadd.f32 %v360_v41, %v359_v40 }
 0x23d   :  { %v362_v28 = vrot.slane %v361_v42, 4 }
 0x23f   :  { %v363_v43 = vadd.f32 %v362_v28, %v361_v42 }
 0x241   :  { %v364_v44 = vrot.slane %v363_v43, 2 }
 0x243   :  { %v365_v45 = vadd.f32 %v364_v44, %v363_v43 }
 0x245   :  { %v366_v46 = vrot.slane %v365_v45, 1 }
 0x247   :  { %v367_v31 = vadd.f32 %v366_v46, %v365_v45 }
 0x249   :  { %369 = vst.msk [vmem:[#allocation3] sm:$0x1] %vm368_vm13, %v367_v31 }
 0x24a   :  { %483 = shalt.err (!%p480_p4)
}
 0x24b   :  { %s484_s20 = scalar_lea.hbm %s648_s5, 16 }
 0x24c   :  { %p485_p5 = scmp.ne.s32.totalorder %s648_s5, %s484_s20  ;;  %p488_p6 = scmp.lt.u32.totalorder %s484_s20, %s648_s5 }
 0x24e   :  { %p490_p7 = pnand %p488_p6, %p485_p5 }
 0x250   :  { %493 = shalt.err (!%p490_p7)
}
 0x251   :  { %379 = dma.vmem_to_hbm [thread:$0]  %s377_s15, 16, %s648_s5, [#allocation4]  }
 0x252   :  { %494 = dma.done.wait [#allocation4], 16  }
 0x253   :  { %495 = vsyncadd [#allocation4], 4294967280 }
 0x254   :  { %383 = vsyncpa [#allocation4], 1 }

</bundles_post_ra>
